<compile_context>
chip_gen: v7x
topology: tpu7x:2x2x1
jax: 0.10.0
libtpu: 0.0.40
codegen_flags: <defaults>
</compile_context>

<pallas_src>
import functools

import jax
import jax.numpy as jnp
from jax.experimental import pallas as pl
from jax.experimental.pallas import tpu as pltpu

_LANE = 128
_SUBLANE = 8
_SINGLE_BLOCK_MAX = 1024  # B at or below this runs as one grid step


def _round_up(n, m):
    return ((n + m - 1) // m) * m


def _mlp_kernel(xt_ref, w1_ref, b1_ref, w2_ref, b2_ref, ot_ref):
    # Hidden layer on the MXU: (Hp, S) @ (S, bb) + (Hp, 1), ReLU on the VPU.
    h = jnp.dot(w1_ref[...], xt_ref[...], preferred_element_type=jnp.float32)
    h = jnp.maximum(h + b1_ref[...], 0.0)
    # Output layer: (A8, Hp) @ (Hp, bb) + (A8, 1).  bb is lane-dense for large
    # batches, so the final store is an unmasked vst and only 8 sublane rows
    # (instead of 128 padded lanes) go back to HBM.
    out = jnp.dot(w2_ref[...], h, preferred_element_type=jnp.float32)
    ot_ref[...] = (out + b2_ref[...]).astype(ot_ref.dtype)


def prepare_params(w1, b1, w2, b2):
    """One-time parameter preparation (hoisted out of the per-call path).

    Args (PyTorch nn.Linear layout):
      w1: (H, S), b1: (H,), w2: (A, H), b2: (A,)
    Returns (w1_p, b1_c, w2_p, b2_c) in the transposed-pipeline layout:
      w1_p: (Hp, S)  b1_c: (Hp, 1)  w2_p: (A8, Hp)  b2_c: (A8, 1)
    with Hp = H rounded up to 128 and A8 = A rounded up to 8.  Zero padding is
    mathematically inert: padded hidden units get zero pre-activation
    (ReLU -> 0) and zero w2 columns; padded action rows are sliced off in the
    wrapper.  The contraction dim S is intentionally NOT padded.
    """
    H, S = w1.shape
    A = w2.shape[0]
    Hp = _round_up(H, _LANE)
    A8 = _round_up(A, _SUBLANE)
    f32 = jnp.float32
    w1_p = jnp.zeros((Hp, S), f32).at[:H, :].set(w1.astype(f32))
    b1_c = jnp.zeros((Hp, 1), f32).at[:H, 0].set(b1.astype(f32))
    w2_p = jnp.zeros((A8, Hp), f32).at[:A, :H].set(w2.astype(f32))
    b2_c = jnp.zeros((A8, 1), f32).at[:A, 0].set(b2.astype(f32))
    return (w1_p, b1_c, w2_p, b2_c)


@functools.partial(jax.jit, static_argnames=("action_space", "block_b"))
def linear_one_hidden_forward(x, params, *, action_space, block_b=2048):
    """Fused Linear -> ReLU -> Linear forward.

    x: (B, S) float32; params: output of prepare_params.
    Returns (B, action_space) float32.
    """
    w1_p, b1_c, w2_p, b2_c = params
    B, S = x.shape
    Hp = w1_p.shape[0]
    A8 = w2_p.shape[0]

    # Batch lives on the lane axis inside the kernel.
    xt = jnp.transpose(x)  # (S, B)

    # Batch tile: single block for small B; otherwise a lane-aligned tile with
    # at least 2 grid steps so the "parallel" axis shards across both v7x TCs.
    if B <= _SINGLE_BLOCK_MAX:
        bb = B
    else:
        half = -(-B // 2)  # ceil(B / 2)
        bb = min(block_b, _round_up(half, _LANE))
    grid = (pl.cdiv(B, bb),)

    # Scoped-VMEM estimate (double-buffered tiles + resident params + hT).
    elt = 4
    vmem_est = elt * (
        2 * S * bb            # xT tiles (double buffered)
        + 2 * A8 * bb         # outT tiles (double buffered)
        + Hp * bb             # hT intermediate
        + 2 * (Hp * S + Hp + A8 * Hp + A8)
    )
    cp_kwargs = dict(dimension_semantics=("parallel",))
    if vmem_est > 12 * 1024 * 1024:
        # Only triggers if block_b is pushed very large (v5e scoped default 16 MiB).
        cp_kwargs["vmem_limit_bytes"] = int(min(64 * 1024 * 1024, 2 * vmem_est))

    cost = pl.CostEstimate(
        flops=2 * B * (S * Hp + Hp * A8),
        transcendentals=0,
        bytes_accessed=elt * (B * S + B * A8 + Hp * S + Hp + A8 * Hp + A8),
    )

    out_t = pl.pallas_call(
        _mlp_kernel,
        out_shape=jax.ShapeDtypeStruct((A8, B), jnp.float32),
        grid=grid,
        in_specs=[
            pl.BlockSpec((S, bb), lambda i: (0, i)),    # activations: tiled over batch (lanes)
            pl.BlockSpec((Hp, S), lambda i: (0, 0)),    # weights/biases stay resident
            pl.BlockSpec((Hp, 1), lambda i: (0, 0)),
            pl.BlockSpec((A8, Hp), lambda i: (0, 0)),
            pl.BlockSpec((A8, 1), lambda i: (0, 0)),
        ],
        out_specs=pl.BlockSpec((A8, bb), lambda i: (0, i)),
        compiler_params=pltpu.CompilerParams(**cp_kwargs),
        cost_estimate=cost,
    )(xt, w1_p, b1_c, w2_p, b2_c)

    # (A8, B) -> (B, action_space): only the real action rows are read back
    # (8*B*4 bytes written by the kernel instead of 128*B*4 before).
    return jnp.transpose(out_t[:action_space, :])


def init_params(key, state_space, action_space, hidden_nodes):
    """PyTorch-style uniform(-1/sqrt(fan_in), 1/sqrt(fan_in)) init."""
    k1, k2, k3, k4 = jax.random.split(key, 4)
    bound1 = 1.0 / jnp.sqrt(jnp.float32(state_space))
    bound2 = 1.0 / jnp.sqrt(jnp.float32(hidden_nodes))
    w1 = jax.random.uniform(k1, (hidden_nodes, state_space), jnp.float32, -bound1, bound1)
    b1 = jax.random.uniform(k2, (hidden_nodes,), jnp.float32, -bound1, bound1)
    w2 = jax.random.uniform(k3, (action_space, hidden_nodes), jnp.float32, -bound2, bound2)
    b2 = jax.random.uniform(k4, (action_space,), jnp.float32, -bound2, bound2)
    return w1, b1, w2, b2


if __name__ == "__main__":
    # FrozenLake 4x4: state_space=16 (one-hot states), action_space=4.
    batch, state_space, action_space, hidden_nodes = 8, 16, 4, 100

    key = jax.random.PRNGKey(0)
    kx, kp, kx2 = jax.random.split(key, 3)
    x = jax.random.normal(kx, (batch, state_space), dtype=jnp.float32)
    w1, b1, w2, b2 = init_params(kp, state_space, action_space, hidden_nodes)

    # One-time param prep (padding only; no per-call glue), reused across calls.
    params = jax.tree_util.tree_map(jax.block_until_ready, prepare_params(w1, b1, w2, b2))

    # Small-batch (single-block) path.
    out = jax.block_until_ready(
        linear_one_hidden_forward(x, params, action_space=action_space))
    ref = jnp.maximum(x @ w1.T + b1, 0.0) @ w2.T + b2
    assert out.shape == (batch, action_space)
    assert jnp.allclose(out, ref, atol=1e-5, rtol=1e-5)

    # Larger-batch path: grid of 2 "parallel" steps with a partial last tile.
    big_b = 1300
    xb = jax.random.normal(kx2, (big_b, state_space), dtype=jnp.float32)
    outb = jax.block_until_ready(
        linear_one_hidden_forward(xb, params, action_space=action_space))
    refb = jnp.maximum(xb @ w1.T + b1, 0.0) @ w2.T + b2
    assert outb.shape == (big_b, action_space)
    assert jnp.allclose(outb, refb, atol=1e-4, rtol=1e-4)

    # TODO(synk): MSELoss / Adam training step not translated (forward-only spec).
    print("KERNEL_OK")
</pallas_src>

<mosaic_0001>
module attributes {stable_mosaic.version = 11 : i64} {
  func.func @_mlp_kernel(%arg0: i32, %arg1: memref<16x8xf32, #tpu.memory_space<vmem>>, %arg2: memref<128x16xf32, #tpu.memory_space<vmem>>, %arg3: memref<128x1xf32, #tpu.memory_space<vmem>>, %arg4: memref<8x128xf32, #tpu.memory_space<vmem>>, %arg5: memref<8x1xf32, #tpu.memory_space<vmem>>, %arg6: memref<8x8xf32, #tpu.memory_space<vmem>>) attributes {dimension_semantics = [#tpu.dimension_semantics<parallel>], iteration_bounds = array<i64: 1>, scalar_prefetch = 0 : i64, scratch_operands = 0 : i64, tpu.core_type = #tpu.core_type<tc>, window_params = [{transform_indices = @transform_0, window_bounds = array<i64: 16, 8>}, {pipeline_mode = #tpu.pipeline_mode<synchronous>, transform_indices = @transform_1, window_bounds = array<i64: 128, 16>}, {pipeline_mode = #tpu.pipeline_mode<synchronous>, transform_indices = @transform_2, window_bounds = array<i64: 128, 1>}, {pipeline_mode = #tpu.pipeline_mode<synchronous>, transform_indices = @transform_3, window_bounds = array<i64: 8, 128>}, {pipeline_mode = #tpu.pipeline_mode<synchronous>, transform_indices = @transform_4, window_bounds = array<i64: 8, 1>}, {transform_indices = @transform_5, window_bounds = array<i64: 8, 8>}]} {
    %c0 = arith.constant 0 : index
    %c0_0 = arith.constant 0 : index
    %0 = vector.load %arg2[%c0, %c0_0] : memref<128x16xf32, #tpu.memory_space<vmem>>, vector<128x16xf32>
    %c0_1 = arith.constant 0 : index
    %c0_2 = arith.constant 0 : index
    %1 = vector.load %arg1[%c0_1, %c0_2] : memref<16x8xf32, #tpu.memory_space<vmem>>, vector<16x8xf32>
    %cst = arith.constant dense<0.000000e+00> : vector<128x8xf32>
    %2 = tpu.matmul %0, %1, %cst {dimension_numbers = #tpu.dot_dimension_numbers<[1], [0], [0], [1], [0, 0, 1, 1], [], []>} : vector<128x16xf32>, vector<16x8xf32>, vector<128x8xf32> -> vector<128x8xf32>
    %c0_3 = arith.constant 0 : index
    %c0_4 = arith.constant 0 : index
    %3 = vector.load %arg3[%c0_3, %c0_4] : memref<128x1xf32, #tpu.memory_space<vmem>>, vector<128x1xf32>
    %4 = vector.broadcast %3 : vector<128x1xf32> to vector<128x8xf32>
    %5 = arith.addf %2, %4 : vector<128x8xf32>
    %cst_5 = arith.constant 0.000000e+00 : f32
    %6 = vector.broadcast %cst_5 : f32 to vector<128x8xf32>
    %7 = arith.maximumf %5, %6 : vector<128x8xf32>
    %c0_6 = arith.constant 0 : index
    %c0_7 = arith.constant 0 : index
    %8 = vector.load %arg4[%c0_6, %c0_7] : memref<8x128xf32, #tpu.memory_space<vmem>>, vector<8x128xf32>
    %cst_8 = arith.constant dense<0.000000e+00> : vector<8x8xf32>
    %9 = tpu.matmul %8, %7, %cst_8 {dimension_numbers = #tpu.dot_dimension_numbers<[1], [0], [0], [1], [0, 0, 1, 1], [], []>} : vector<8x128xf32>, vector<128x8xf32>, vector<8x8xf32> -> vector<8x8xf32>
    %c0_9 = arith.constant 0 : index
    %c0_10 = arith.constant 0 : index
    %10 = vector.load %arg5[%c0_9, %c0_10] : memref<8x1xf32, #tpu.memory_space<vmem>>, vector<8x1xf32>
    %11 = vector.broadcast %10 : vector<8x1xf32> to vector<8x8xf32>
    %12 = arith.addf %9, %11 : vector<8x8xf32>
    %c0_11 = arith.constant 0 : index
    %c0_12 = arith.constant 0 : index
    %13 = vector.load %arg6[%c0_11, %c0_12] : memref<8x8xf32, #tpu.memory_space<vmem>>, vector<8x8xf32>
    tpu.vector_store %arg6[%c0_11, %c0_12], %12 {strides = array<i32>} : memref<8x8xf32, #tpu.memory_space<vmem>>, vector<8x8xf32>,
    return
  }
  func.func @transform_0(%arg0: i32) -> (i32, i32) {
    %c0_i32 = arith.constant 0 : i32
    %c0_i32_0 = arith.constant 0 : i32
    return %c0_i32, %arg0 : i32, i32
  }
  func.func @transform_1(%arg0: i32) -> (i32, i32) {
    %c0_i32 = arith.constant 0 : i32
    %c0_i32_0 = arith.constant 0 : i32
    %c0_i32_1 = arith.constant 0 : i32
    return %c0_i32, %c0_i32_0 : i32, i32
  }
  func.func @transform_2(%arg0: i32) -> (i32, i32) {
    %c0_i32 = arith.constant 0 : i32
    %c0_i32_0 = arith.constant 0 : i32
    %c0_i32_1 = arith.constant 0 : i32
    return %c0_i32, %c0_i32_0 : i32, i32
  }
  func.func @transform_3(%arg0: i32) -> (i32, i32) {
    %c0_i32 = arith.constant 0 : i32
    %c0_i32_0 = arith.constant 0 : i32
    %c0_i32_1 = arith.constant 0 : i32
    return %c0_i32, %c0_i32_0 : i32, i32
  }
  func.func @transform_4(%arg0: i32) -> (i32, i32) {
    %c0_i32 = arith.constant 0 : i32
    %c0_i32_0 = arith.constant 0 : i32
    %c0_i32_1 = arith.constant 0 : i32
    return %c0_i32, %c0_i32_0 : i32, i32
  }
  func.func @transform_5(%arg0: i32) -> (i32, i32) {
    %c0_i32 = arith.constant 0 : i32
    %c0_i32_0 = arith.constant 0 : i32
    return %c0_i32, %arg0 : i32, i32
  }
}

</mosaic_0001>

<bundles_post_ra>
// kernel: linear_one_hidden_forward.1
= control target key start
LH: loop header
LB: loop body
LE: loop exit
PB: predicated region body
PF: predicated region fallthrough
CT: control target
= control target key end

     0   :  { %vm134_vm0 = vcmask 130048   ;;  %v575_v3 = vmov 0   ;;  %v576_v37 = vmov 0.0|0.0   ;;  %vm577_vm1 = vmmov 0   ;;  %s744_s0 = inlined_call_operand.vmem [shape: f32[16,8], index: 0, kind: input, shape index: {}]   ;;  %s745_s1 = inlined_call_operand.vmem [shape: f32[128,16], index: 1, kind: input, shape index: {}]   ;;  %s746_s2 = inlined_call_operand.vmem [shape: f32[128,1], index: 2, kind: input, shape index: {}]   ;;  %s747_s4 = inlined_call_operand.vmem [shape: f32[8,1], index: 4, kind: input, shape index: {}]   ;;  %s748_s3 = inlined_call_operand.vmem [shape: f32[8,128], index: 3, kind: input, shape index: {}]   ;;  %s749_s5 = inlined_call_operand.vmem [shape: f32[8,8], index: 5, kind: output, shape index: {}]  }
   0x1   :  { %v36_v0 = vld [vmem:[%s744_s0] sm:$0xff]  ;;  %v37_v1 = vld [vmem:[%s744_s0 + $0x8] sm:$0xff]  ;;  %573 = vset.pattern.permute.xlu0 %v575_v3  ;;  %574 = vset.pattern.permute.xlu1 %v575_v3  ;;  %v22_v6 = vld [vmem:[%s745_s1 + $0x10] sm:$0xff]  ;;  %v578_v38 = vmov 0.0   ;;  %vm421_vm2 = vcmask 64512  }
   0x2   :  { %v20_v2 = vld [vmem:[%s745_s1] sm:$0xff]  ;;  %v541_v4 = vpack.c.bf16 %v37_v1, %v36_v0  ;;  %v21_v5 = vld [vmem:[%s745_s1 + $0x8] sm:$0xff]  ;;  %v40_v8 = vld [vmem:[%s746_s2 + $0x10] sm:$0xff]  ;;  %545 = vmatprep.subr.bf16.mxu1 %v576_v37  ;;  %538 = vmatprep.mubr.msk.f32.mxu1 %vm577_vm1, %v578_v38 }
   0x3   :  { %482 = vmatprep.mubr.msk.f32.mxu0 %vm134_vm0, %v20_v2  ;;  %v38_v7 = vld [vmem:[%s746_s2] sm:$0xff]  ;;  %v23_v9 = vld [vmem:[%s745_s1 + $0x18] sm:$0xff]  ;;  %v39_v10 = vld [vmem:[%s746_s2 + $0x8] sm:$0xff]  ;;  %66 = vperm.xlu1 %574, %v40_v8  }
   0x4   :  { %542 = vmatprep.subr.bf16.mxu0 %v541_v4  ;;  %56 = vperm.xlu0 %573, %v38_v7   ;;  %v24_v11 = vld [vmem:[%s745_s1 + $0x20] sm:$0xff]  ;;  %v41_v12 = vld [vmem:[%s746_s2 + $0x18] sm:$0xff]  ;;  %v25_v13 = vld [vmem:[%s745_s1 + $0x28] sm:$0xff] }
   0x5   :  { %544 = vmatpush3.bf16.msra.mxu0 %v541_v4  ;;  %v42_v14 = vld [vmem:[%s746_s2 + $0x20] sm:$0xff]  ;;  %v26_v15 = vld [vmem:[%s745_s1 + $0x30] sm:$0xff]  ;;  %v43_v16 = vld [vmem:[%s746_s2 + $0x28] sm:$0xff] }
   0x6   :  { %v27_v17 = vld [vmem:[%s745_s1 + $0x38] sm:$0xff]  ;;  %v44_v18 = vld [vmem:[%s746_s2 + $0x30] sm:$0xff]  ;;  %v28_v19 = vld [vmem:[%s745_s1 + $0x40] sm:$0xff] }
   0x7   :  { %71 = vperm.xlu1 %574, %v41_v12   ;;  %v45_v20 = vld [vmem:[%s746_s2 + $0x38] sm:$0xff]  ;;  %v29_v21 = vld [vmem:[%s745_s1 + $0x48] sm:$0xff]  ;;  %v46_v22 = vld [vmem:[%s746_s2 + $0x40] sm:$0xff] }
   0x8   :  { %483 = vmatmul.mubr.msk.f32.vlgmr.msra.gmra.mrb[0].mxu0 %vm134_vm0, %v21_v5  ;;  %61 = vperm.xlu0 %573, %v39_v10   ;;  %v30_v23 = vld [vmem:[%s745_s1 + $0x50] sm:$0xff]  ;;  %v47_v24 = vld [vmem:[%s746_s2 + $0x48] sm:$0xff]  ;;  %v31_v25 = vld [vmem:[%s745_s1 + $0x58] sm:$0xff] }
   0x9   :  { %485 = vmatprep.mubr.msk.f32.mxu0 %vm134_vm0, %v22_v6  ;;  %v48_v26 = vld [vmem:[%s746_s2 + $0x50] sm:$0xff]  ;;  %v32_v27 = vld [vmem:[%s745_s1 + $0x60] sm:$0xff]  ;;  %v49_v28 = vld [vmem:[%s746_s2 + $0x58] sm:$0xff] }
   0xa   :  { %v33_v29 = vld [vmem:[%s745_s1 + $0x68] sm:$0xff]  ;;  %v50_v30 = vld [vmem:[%s746_s2 + $0x60] sm:$0xff]  ;;  %v34_v31 = vld [vmem:[%s745_s1 + $0x70] sm:$0xff] }
   0xb   :  { %81 = vperm.xlu1 %574, %v43_v16   ;;  %v51_v32 = vld [vmem:[%s746_s2 + $0x68] sm:$0xff]  ;;  %v35_v33 = vld [vmem:[%s745_s1 + $0x78] sm:$0xff]  ;;  %v52_v34 = vld [vmem:[%s746_s2 + $0x70] sm:$0xff] }
   0xc   :  { %486 = vmatmul.mubr.msk.f32.gmra.mrb[2].mxu0 %vm134_vm0, %v23_v9  ;;  %76 = vperm.xlu0 %573, %v42_v14   ;;  %v53_v35 = vld [vmem:[%s746_s2 + $0x78] sm:$0xff]  ;;  %v345_v36 = vld [vmem:[%s747_s4] sm:$0xff] }
   0xd   :  { %488 = vmatprep.mubr.msk.f32.mxu0 %vm134_vm0, %v24_v11 }
   0xf   :  { %91 = vperm.xlu1 %574, %v45_v20  }
  0x10   :  { %489 = vmatmul.mubr.msk.f32.gmra.mrb[4].mxu0 %vm134_vm0, %v25_v13  ;;  %86 = vperm.xlu0 %573, %v44_v18  }
  0x11   :  { %491 = vmatprep.mubr.msk.f32.mxu0 %vm134_vm0, %v26_v15 }
  0x13   :  { %101 = vperm.xlu1 %574, %v47_v24  }
  0x14   :  { %492 = vmatmul.mubr.msk.f32.gmra.mrb[6].mxu0 %vm134_vm0, %v27_v17  ;;  %96 = vperm.xlu0 %573, %v46_v22  }
  0x15   :  { %494 = vmatprep.mubr.msk.f32.mxu0 %vm134_vm0, %v28_v19 }
  0x17   :  { %111 = vperm.xlu1 %574, %v49_v28  }
  0x18   :  { %495 = vmatmul.mubr.msk.f32.gmra.mrb[8].mxu0 %vm134_vm0, %v29_v21  ;;  %106 = vperm.xlu0 %573, %v48_v26  }
  0x19   :  { %497 = vmatprep.mubr.msk.f32.mxu0 %vm134_vm0, %v30_v23 }
  0x1b   :  { %121 = vperm.xlu1 %574, %v51_v32  }
  0x1c   :  { %498 = vmatmul.mubr.msk.f32.gmra.mrb[10].mxu0 %vm134_vm0, %v31_v25  ;;  %116 = vperm.xlu0 %573, %v50_v30  }
  0x1d   :  { %500 = vmatprep.mubr.msk.f32.mxu0 %vm134_vm0, %v32_v27 }
  0x1f   :  { %131 = vperm.xlu1 %574, %v53_v35  }
  0x20   :  { %501 = vmatmul.mubr.msk.f32.gmra.mrb[12].mxu0 %vm134_vm0, %v33_v29  ;;  %126 = vperm.xlu0 %573, %v52_v34  }
  0x21   :  { %503 = vmatprep.mubr.msk.f32.mxu0 %vm134_vm0, %v34_v31 }
  0x24   :  { %504 = vmatmul.mubr.msk.f32.gmra.mrb[14].mxu0 %vm134_vm0, %v35_v33  ;;  %348 = vperm.xlu0 %573, %v345_v36  }
  0x82   :  { %v67_v39 = vpop.permute.xlu1 %66 }
  0x83   :  { %v57_v40 = vpop.permute.xlu0 %56 }
  0x86   :  { %v72_v41 = vpop.permute.xlu1 %71 }
  0x87   :  { %v62_v42 = vpop.permute.xlu0 %61 }
  0x8a   :  { %v82_v43 = vpop.permute.xlu1 %81 }
  0x8b   :  { %v77_v44 = vpop.permute.xlu0 %76 }
  0x8e   :  { %v92_v50 = vpop.permute.xlu1 %91 }
  0x8f   :  { %v87_v53 = vpop.permute.xlu0 %86 }
  0x92   :  { %v102_v63 = vpop.permute.xlu1 %101 }
  0x93   :  { %v97_v2 = vpop.permute.xlu0 %96 }
  0x96   :  { %v112_v11 = vpop.permute.xlu1 %111 }
  0x97   :  { %v107_v14 = vpop.permute.xlu0 %106 }
  0x9a   :  { %v122_v24 = vpop.permute.xlu1 %121 }
  0x9b   :  { %v117_v27 = vpop.permute.xlu0 %116 }
  0x9e   :  { %v132_v36 = vpop.permute.xlu1 %131 }
  0xdb   :  { %v484_v45 = vpop.f32.mrb[0].mxu0 }
  0xdc   :  { %v255_v46 = vadd.f32 %v484_v45, %v62_v42  ;;  %v249_v47 = vpop.f32.mrb[1].mxu0 }
  0xdd   :  { %v250_v48 = vadd.f32 %v249_v47, %v57_v40  ;;  %v127_v40 = vpop.permute.xlu0 %126 }
  0xde   :  { %v329_v49 = vmax.f32 %v255_v46, 0.0 }
  0xdf   :  { %v328_v51 = vmax.f32 %v250_v48, 0.0  ;;  %v487_v52 = vpop.f32.mrb[2].mxu0  ;;  %v344_v48 = vld [vmem:[%s748_s3] sm:$0xff] }
  0xe0   :  { %v265_v54 = vadd.f32 %v487_v52, %v72_v41  ;;  %v259_v55 = vpop.f32.mrb[3].mxu0 }
  0xe1   :  { %v260_v56 = vadd.f32 %v259_v55, %v67_v39  ;;  %v546_v57 = vpack.c.bf16 %v329_v49, %v328_v51  ;;  %v349_v49 = vpop.permute.xlu0 %348 }
  0xe2   :  { %v331_v58 = vmax.f32 %v265_v54, 0.0 }
  0xe3   :  { %v330_v59 = vmax.f32 %v260_v56, 0.0  ;;  %v490_v60 = vpop.f32.mrb[4].mxu0  ;;  %547 = vmatpush3.bf16.msra.mxu1 %v546_v57 }
  0xe4   :  { %v275_v61 = vadd.f32 %v490_v60, %v82_v43  ;;  %v269_v62 = vpop.f32.mrb[5].mxu0  ;;  %548 = vmatprep.subr.bf16.mxu1 %v576_v37 }
  0xe5   :  { %v549_v0 = vpack.c.bf16 %v331_v58, %v330_v59  ;;  %v270_v1 = vadd.f32 %v269_v62, %v77_v44 }
  0xe6   :  { %v333_v3 = vmax.f32 %v275_v61, 0.0 }
  0xe7   :  { %v332_v4 = vmax.f32 %v270_v1, 0.0  ;;  %v493_v5 = vpop.f32.mrb[6].mxu0  ;;  %550 = vmatpush3.bf16.msra.mxu1 %v549_v0 }
  0xe8   :  { %v285_v6 = vadd.f32 %v493_v5, %v92_v50  ;;  %v279_v7 = vpop.f32.mrb[7].mxu0  ;;  %551 = vmatprep.subr.bf16.mxu1 %v576_v37 }
  0xe9   :  { %v552_v8 = vpack.c.bf16 %v333_v3, %v332_v4  ;;  %v280_v9 = vadd.f32 %v279_v7, %v87_v53 }
  0xea   :  { %v335_v10 = vmax.f32 %v285_v6, 0.0 }
  0xeb   :  { %v334_v12 = vmax.f32 %v280_v9, 0.0  ;;  %v496_v13 = vpop.f32.mrb[8].mxu0  ;;  %553 = vmatpush3.bf16.msra.mxu1 %v552_v8 }
  0xec   :  { %v295_v15 = vadd.f32 %v496_v13, %v102_v63  ;;  %v289_v16 = vpop.f32.mrb[9].mxu0  ;;  %554 = vmatprep.subr.bf16.mxu1 %v576_v37 }
  0xed   :  { %v555_v17 = vpack.c.bf16 %v335_v10, %v334_v12  ;;  %v290_v18 = vadd.f32 %v289_v16, %v97_v2 }
  0xee   :  { %v337_v19 = vmax.f32 %v295_v15, 0.0 }
  0xef   :  { %v336_v20 = vmax.f32 %v290_v18, 0.0  ;;  %v499_v21 = vpop.f32.mrb[10].mxu0  ;;  %556 = vmatpush3.bf16.msra.mxu1 %v555_v17 }
  0xf0   :  { %v305_v22 = vadd.f32 %v499_v21, %v112_v11  ;;  %v299_v23 = vpop.f32.mrb[11].mxu0  ;;  %557 = vmatprep.subr.bf16.mxu1 %v576_v37 }
  0xf1   :  { %v558_v25 = vpack.c.bf16 %v337_v19, %v336_v20  ;;  %v300_v26 = vadd.f32 %v299_v23, %v107_v14 }
  0xf2   :  { %v339_v28 = vmax.f32 %v305_v22, 0.0 }
  0xf3   :  { %v338_v29 = vmax.f32 %v300_v26, 0.0  ;;  %v502_v30 = vpop.f32.mrb[12].mxu0  ;;  %559 = vmatpush3.bf16.msra.mxu1 %v558_v25 }
  0xf4   :  { %v315_v31 = vadd.f32 %v502_v30, %v122_v24  ;;  %v309_v32 = vpop.f32.mrb[13].mxu0  ;;  %560 = vmatprep.subr.bf16.mxu1 %v576_v37 }
  0xf5   :  { %v561_v33 = vpack.c.bf16 %v339_v28, %v338_v29  ;;  %v310_v34 = vadd.f32 %v309_v32, %v117_v27 }
  0xf6   :  { %v341_v35 = vmax.f32 %v315_v31, 0.0 }
  0xf7   :  { %v340_v38 = vmax.f32 %v310_v34, 0.0  ;;  %v505_v39 = vpop.f32.mrb[14].mxu0  ;;  %562 = vmatpush3.bf16.msra.mxu1 %v561_v33 }
  0xf8   :  { %v325_v41 = vadd.f32 %v505_v39, %v132_v36  ;;  %v319_v42 = vpop.f32.mrb[15].mxu0  ;;  %563 = vmatprep.subr.bf16.mxu1 %v576_v37 }
  0xf9   :  { %v564_v43 = vpack.c.bf16 %v341_v35, %v340_v38  ;;  %v320_v44 = vadd.f32 %v319_v42, %v127_v40 }
  0xfa   :  { %v343_v45 = vmax.f32 %v325_v41, 0.0 }
  0xfb   :  { %v342_v46 = vmax.f32 %v320_v44, 0.0  ;;  %565 = vmatpush3.bf16.msra.mxu1 %v564_v43 }
  0xfc   :  { %566 = vmatprep.subr.bf16.mxu1 %v576_v37 }
  0xfd   :  { %v567_v47 = vpack.c.bf16 %v343_v45, %v342_v46 }
  0xff   :  { %568 = vmatpush3.bf16.msra.mxu1 %v567_v47 }
 0x102   :  { %539 = vmatmul.mubr.f32.vlgmr.msra.gmra.mrb[0].mxu1 %v344_v48 }
 0x1d5   :  { %v417_v50 = vpop.f32.mrb[0].mxu1 }
 0x1d6   :  { %v418_v51 = vadd.f32 %v417_v50, %v349_v49  ;;  %v540_v52 = vpop.f32.mrb[1].mxu1 }
 0x1d8   :  { %422 = vst.msk [vmem:[%s749_s5] sm:$0xff] %vm421_vm2, %v418_v51 }

</bundles_post_ra>
